<compile_context>
chip_gen: v7x
topology: tpu7x:2x2x1
jax: 0.10.0
libtpu: 0.0.40
codegen_flags: <defaults>
</compile_context>

<pallas_src>
import math
import functools

import jax
import jax.numpy as jnp
from jax.experimental import pallas as pl
from jax.experimental.pallas import tpu as pltpu


_NEG_BIG = -1e30            # finite "minus inf": no inf-inf NaNs, exp underflows to 0


def _vmem_capacity_bytes():
    try:
        info = pltpu.get_tpu_info()
        cap = getattr(info, "vmem_capacity_bytes", None)
        if cap:
            return int(cap)
    except Exception:
        pass
    return 64 * 1024 * 1024          # conservative (v7x-sized) fallback


_VMEM_CAP = _vmem_capacity_bytes()
_VMEM_LIMIT = min(int(_VMEM_CAP * 3 // 4), 100 * 1024 * 1024)

if _VMEM_CAP > 96 * 1024 * 1024:     # v5e / v6e: 128 MiB VMEM -> bigger blocks
    _MM_TM, _MM_TN, _MM_TK = 512, 512, 1024
    _FLASH_TQ, _FLASH_TKV = 256, 512
else:                                # v7x: 64 MiB VMEM -> keep tiles conservative
    _MM_TM, _MM_TN, _MM_TK = 256, 256, 512
    _FLASH_TQ, _FLASH_TKV = 128, 256


def _sublane_quantum(dtype):
    """dtype-aware sublane packing quantum: 8 for f32, 16 for bf16, 32 for int8."""
    itemsize = jnp.dtype(dtype).itemsize
    return max(8, 32 // max(itemsize, 1))


def _pick_tile(dim, target, quantum):
    """Largest tile <= target that is a multiple of `quantum` and divides `dim`.
    Falls back to the full dim (always a legal block shape)."""
    if dim <= target:
        return dim
    t = (target // quantum) * quantum
    while t >= quantum:
        if dim % t == 0:
            return t
        t -= quantum
    return dim


# ----------------------- tiled linear projection (x @ w + b) -----------------------
def _matmul_bias_kernel(x_ref, w_ref, b_ref, o_ref, acc_ref, *, k_axis):
    k = pl.program_id(k_axis)

    @pl.when(k == 0)
    def _init():
        acc_ref[...] = jnp.zeros_like(acc_ref)

    acc_ref[...] += jnp.dot(x_ref[...], w_ref[...],
                            preferred_element_type=jnp.float32)

    @pl.when(k == pl.num_programs(k_axis) - 1)
    def _finalize():
        o_ref[...] = (acc_ref[...] + b_ref[...].astype(jnp.float32)
                      ).astype(o_ref.dtype)


def matmul_bias(x, w, b):
    """x: [M, K] @ w: [K, N] + b: [1, N] -> [M, N]; tiled, f32 accumulation.
    Weights/bias are already in [K, N] / [1, N] layout (prepared at init)."""
    M, K = x.shape
    N = w.shape[1]
    tm = _pick_tile(M, _MM_TM, _sublane_quantum(x.dtype))
    tn = _pick_tile(N, _MM_TN, 128)
    tk = _pick_tile(K, _MM_TK, 128)
    kern = functools.partial(_matmul_bias_kernel, k_axis=2)
    return pl.pallas_call(
        kern,
        out_shape=jax.ShapeDtypeStruct((M, N), x.dtype),
        grid_spec=pltpu.PrefetchScalarGridSpec(
            num_scalar_prefetch=0,
            grid=(M // tm, N // tn, K // tk),            # reduction (K) axis last
            in_specs=[
                pl.BlockSpec((tm, tk), lambda i, j, k: (i, k)),
                pl.BlockSpec((tk, tn), lambda i, j, k: (k, j)),
                pl.BlockSpec((1, tn), lambda i, j, k: (0, j)),
            ],
            out_specs=pl.BlockSpec((tm, tn), lambda i, j, k: (i, j)),
            scratch_shapes=[pltpu.VMEM((tm, tn), jnp.float32)],
        ),
        compiler_params=pltpu.CompilerParams(
            dimension_semantics=("parallel", "parallel", "arbitrary"),
            vmem_limit_bytes=_VMEM_LIMIT,
        ),
    )(x, w, b)


def fused_qkv_matmul(x, w3, b3):
    """x: [M, K]; w3: [3, K, D]; b3: [3, 1, D] -> [3, M, D].
    Q/K/V are written directly into three contiguous [M, D] slabs (leading grid
    axis p selects q/k/v); no post-hoc column slicing of the activations."""
    M, K = x.shape
    D = w3.shape[2]
    tm = _pick_tile(M, _MM_TM, _sublane_quantum(x.dtype))
    tn = _pick_tile(D, _MM_TN, 128)
    tk = _pick_tile(K, _MM_TK, 128)
    kern = functools.partial(_matmul_bias_kernel, k_axis=3)
    return pl.pallas_call(
        kern,
        out_shape=jax.ShapeDtypeStruct((3, M, D), x.dtype),
        grid_spec=pltpu.PrefetchScalarGridSpec(
            num_scalar_prefetch=0,
            grid=(3, M // tm, D // tn, K // tk),         # reduction (K) axis last
            in_specs=[
                pl.BlockSpec((tm, tk), lambda p, i, j, k: (i, k)),
                pl.BlockSpec((pl.Squeezed(), tk, tn), lambda p, i, j, k: (p, k, j)),
                pl.BlockSpec((pl.Squeezed(), 1, tn), lambda p, i, j, k: (p, 0, j)),
            ],
            out_specs=pl.BlockSpec((pl.Squeezed(), tm, tn),
                                   lambda p, i, j, k: (p, i, j)),
            scratch_shapes=[pltpu.VMEM((tm, tn), jnp.float32)],
        ),
        compiler_params=pltpu.CompilerParams(
            dimension_semantics=("parallel", "parallel", "parallel", "arbitrary"),
            vmem_limit_bytes=_VMEM_LIMIT,
        ),
    )(x, w3, b3)


# ----------------------- flash-style multi-head attention --------------------------
def _flash_attn_kernel(q_ref, k_ref, v_ref, *rest, has_bias, approx_recip):
    if has_bias:
        bias_ref, o_ref, q_sc, m_sc, l_sc, acc_sc = rest
    else:
        bias_ref = None
        o_ref, q_sc, m_sc, l_sc, acc_sc = rest

    ki = pl.program_id(2)

    @pl.when(ki == 0)
    def _init():
        m_sc[...] = jnp.full_like(m_sc, _NEG_BIG)
        l_sc[...] = jnp.zeros_like(l_sc)
        acc_sc[...] = jnp.zeros_like(acc_sc)
        # Q block is resident across the KV axis: transpose it ONCE per Q block
        # into VMEM scratch instead of every KV step.
        q_sc[...] = jnp.swapaxes(q_ref[...], 0, 1)      # (H, tq, d_k)

    q = q_sc[...]                                       # (H, tq,  d_k), pre-scaled
    k = jnp.swapaxes(k_ref[...], 0, 1)                  # (H, tkv, d_k)
    v = jnp.swapaxes(v_ref[...], 0, 1)                  # (H, tkv, d_k)
    # TODO(synk): if Mosaic grows support for non-leading dot_general batch dims
    # (batch at axis 1), the K/V relayouts above can be removed entirely.

    # scores[h, q, kv]; K consumed without .T, f32 accumulation on the MXU.
    # 1/sqrt(d_k) is already folded into the Q projection weights.
    s = jax.lax.dot_general(
        q, k, dimension_numbers=(((2,), (2,)), ((0,), (0,))),
        preferred_element_type=jnp.float32)             # (H, tq, tkv)

    if has_bias:
        # Additive key-padding bias (0 / -1e30), broadcast in-kernel;
        # never materialized as [B, Sq, Sk].
        s = s + bias_ref[...][:, None, :]               # (1, tkv) -> (H, tq, tkv)

    m_prev = m_sc[...]
    m_new = jnp.maximum(m_prev, jnp.max(s, axis=-1, keepdims=True))
    alpha = jnp.exp(m_prev - m_new)
    p = jnp.exp(s - m_new)                              # (H, tq, tkv) f32
    l_sc[...] = alpha * l_sc[...] + jnp.sum(p, axis=-1, keepdims=True)

    pv = jax.lax.dot_general(                           # (H, tq, d_k)
        p.astype(v.dtype), v,
        dimension_numbers=(((2,), (1,)), ((0,), (0,))),
        preferred_element_type=jnp.float32)
    acc_sc[...] = alpha * acc_sc[...] + pv
    m_sc[...] = m_new

    @pl.when(ki == pl.num_programs(2) - 1)
    def _finalize():
        # Normalize AFTER the PV matmul; approx reciprocal (EUP) for bf16 output.
        out = acc_sc[...] * pl.reciprocal(l_sc[...], approx=approx_recip)
        o_ref[...] = jnp.swapaxes(out, 0, 1).astype(o_ref.dtype)
    # TODO(synk): training-mode dropout on the attention probabilities is not
    # implemented (eval / identity).


def _flash_attention(q, k, v, bias, *, fused):
    """fused=True : q is the fused [3, B, S, H, d_k] QKV buffer (k, v ignored).
    fused=False: q [B, Sq, H, d_k]; k, v [B, Sk, H, d_k].
    bias: additive f32 key-padding bias [B, 1, Sk] or None.
    Returns context as [B, Sq, H, d_k]."""
    if fused:
        _, B, Sq, H, d_k = q.shape
        Sk = Sq
    else:
        B, Sq, H, d_k = q.shape
        Sk = k.shape[1]

    tq = _pick_tile(Sq, _FLASH_TQ, _sublane_quantum(q.dtype))
    tkv = _pick_tile(Sk, _FLASH_TKV, 128)

    if fused:
        q_spec = pl.BlockSpec((pl.Squeezed(), pl.Squeezed(), tq, H, d_k),
                              lambda b, qi, ki: (0, b, qi, 0, 0))
        k_spec = pl.BlockSpec((pl.Squeezed(), pl.Squeezed(), tkv, H, d_k),
                              lambda b, qi, ki: (1, b, ki, 0, 0))
        v_spec = pl.BlockSpec((pl.Squeezed(), pl.Squeezed(), tkv, H, d_k),
                              lambda b, qi, ki: (2, b, ki, 0, 0))
        inputs = [q, q, q]
    else:
        q_spec = pl.BlockSpec((pl.Squeezed(), tq, H, d_k),
                              lambda b, qi, ki: (b, qi, 0, 0))
        k_spec = pl.BlockSpec((pl.Squeezed(), tkv, H, d_k),
                              lambda b, qi, ki: (b, ki, 0, 0))
        v_spec = pl.BlockSpec((pl.Squeezed(), tkv, H, d_k),
                              lambda b, qi, ki: (b, ki, 0, 0))
        inputs = [q, k, v]
    # TODO(synk): if profiling shows exposed K/V DMA, add
    # pipeline_mode=pl.Buffered(3) to k_spec/v_spec where VMEM headroom exists.

    in_specs = [q_spec, k_spec, v_spec]
    if bias is not None:
        in_specs.append(pl.BlockSpec((pl.Squeezed(), 1, tkv),
                                     lambda b, qi, ki: (b, 0, ki)))
        inputs.append(bias)

    out_spec = pl.BlockSpec((pl.Squeezed(), tq, H, d_k),
                            lambda b, qi, ki: (b, qi, 0, 0))
    kern = functools.partial(_flash_attn_kernel,
                             has_bias=bias is not None,
                             approx_recip=(q.dtype == jnp.bfloat16))

    return pl.pallas_call(
        kern,
        out_shape=jax.ShapeDtypeStruct((B, Sq, H, d_k), q.dtype),
        grid_spec=pltpu.PrefetchScalarGridSpec(
            num_scalar_prefetch=0,
            grid=(B, Sq // tq, Sk // tkv),               # KV (reduction) axis last
            in_specs=in_specs,
            out_specs=out_spec,
            scratch_shapes=[
                pltpu.VMEM((H, tq, d_k), q.dtype),       # Q transposed once / block
                pltpu.VMEM((H, tq, 1), jnp.float32),     # running max m
                pltpu.VMEM((H, tq, 1), jnp.float32),     # running sum l
                pltpu.VMEM((H, tq, d_k), jnp.float32),   # output accumulator
            ],
        ),
        compiler_params=pltpu.CompilerParams(
            dimension_semantics=("parallel", "parallel", "arbitrary"),
            vmem_limit_bytes=_VMEM_LIMIT,
        ),
    )(*inputs)


# --------------------------------- parameter prep ----------------------------------
def init_params(key, d_model):
    """PyTorch nn.Linear-style init U(-1/sqrt(fan_in), 1/sqrt(fan_in));
    weights stored torch-style as [D_out, D_in]."""
    bound = 1.0 / math.sqrt(d_model)
    keys = jax.random.split(key, 8)
    w = lambda k: jax.random.uniform(k, (d_model, d_model), jnp.float32, -bound, bound)
    b = lambda k: jax.random.uniform(k, (d_model,), jnp.float32, -bound, bound)
    return dict(wq=w(keys[0]), bq=b(keys[1]), wk=w(keys[2]), bk=b(keys[3]),
                wv=w(keys[4]), bv=b(keys[5]), wo=w(keys[6]), bo=b(keys[7]))


def prepare_params(params, h):
    """Done ONCE at init (not per forward): transpose weights into [K, N],
    fold 1/sqrt(d_k) into the Q projection, and build the fused QKV weight."""
    d_model = params["wq"].shape[0]
    d_k = d_model // h
    scale = 1.0 / math.sqrt(d_k)
    wq_t = params["wq"].T * scale
    bq_s = params["bq"] * scale
    wk_t = params["wk"].T
    wv_t = params["wv"].T
    return dict(
        w_qkv=jnp.stack([wq_t, wk_t, wv_t], axis=0),                    # [3, D, D]
        b_qkv=jnp.stack([bq_s, params["bk"], params["bv"]], 0)[:, None, :],  # [3,1,D]
        wq_t=wq_t, bq=bq_s.reshape(1, -1),
        wk_t=wk_t, bk=params["bk"].reshape(1, -1),
        wv_t=wv_t, bv=params["bv"].reshape(1, -1),
        wo_t=params["wo"].T, bo=params["bo"].reshape(1, -1),
    )


# --------------------------------- full MHA forward --------------------------------
def multi_head_attention(pp, h, query, key=None, value=None, mask=None):
    """Mirrors Multi_Head_Attention.forward (no incremental cache, eval dropout).

    pp: output of prepare_params(); query: [B, Sq, D];
    key/value: [B, Sk, D] or None (self-attention);
    mask: [B, Sk] key-padding mask (0 = masked key) or None.
    """
    # TODO(synk): incremental-decoding KV-cache branch (cache=...) not implemented.
    assert (key is None) == (value is None)
    self_attention = key is None
    B, Sq, D = query.shape
    Sk = Sq if self_attention else key.shape[1]
    assert D % h == 0
    d_k = D // h

    bias = None
    if mask is not None:
        # Precomputed additive key-padding bias (0 / -1e30), [B, 1, Sk] f32.
        bias = jnp.where(mask.reshape(B, 1, Sk) == 0,
                         jnp.float32(_NEG_BIG), jnp.float32(0.0))

    if self_attention:
        # Fused QKV: x read once, weights already fused/transposed at init,
        # output written straight into [3, M, D] (no activation slicing).
        qkv3 = fused_qkv_matmul(query.reshape(B * Sq, D), pp["w_qkv"], pp["b_qkv"])
        qkv5 = qkv3.reshape(3, B, Sq, h, d_k)          # free reshape
        ctx = _flash_attention(qkv5, None, None, bias, fused=True)
    else:
        q2d = matmul_bias(query.reshape(B * Sq, D), pp["wq_t"], pp["bq"])
        k2d = matmul_bias(key.reshape(B * Sk, D), pp["wk_t"], pp["bk"])
        v2d = matmul_bias(value.reshape(B * Sk, D), pp["wv_t"], pp["bv"])
        ctx = _flash_attention(q2d.reshape(B, Sq, h, d_k),
                               k2d.reshape(B, Sk, h, d_k),
                               v2d.reshape(B, Sk, h, d_k), bias, fused=False)

    out2d = matmul_bias(ctx.reshape(B * Sq, D), pp["wo_t"], pp["bo"])
    return out2d.reshape(B, Sq, D)


# ------------------------------- pure-JAX reference --------------------------------
def reference_forward(params, h, query, mask):
    B, S, D = query.shape
    d_k = D // h
    lin = lambda x, w, b: x @ w.T + b
    sh = lambda x: x.reshape(B, -1, h, d_k).transpose(0, 2, 1, 3)
    q = sh(lin(query, params["wq"], params["bq"])) / math.sqrt(d_k)
    k = sh(lin(query, params["wk"], params["bk"]))
    v = sh(lin(query, params["wv"], params["bv"]))
    scores = jnp.einsum("bhqd,bhkd->bhqk", q, k)
    m = mask.astype(jnp.int32)[:, None, None, :]           # [B,1,1,Sk]
    scores = jnp.where(m == 0, -jnp.inf, scores)
    probs = jax.nn.softmax(scores.astype(jnp.float32), axis=-1).astype(scores.dtype)
    ctx = jnp.einsum("bhqk,bhkd->bhqd", probs, v)
    out = ctx.transpose(0, 2, 1, 3).reshape(B, S, D)
    return lin(out, params["wo"], params["bo"])


if __name__ == "__main__":
    B, S, d_model, h = 2, 8, 32, 4

    root = jax.random.PRNGKey(0)
    k_param, k_x = jax.random.split(root)
    params = init_params(k_param, d_model)
    x = jax.random.normal(k_x, (B, S, d_model), jnp.float32)

    # Key-padding mask: batch 1 has its last 2 key positions masked out.
    mask = jnp.ones((B, S), jnp.int32).at[1, 6:].set(0)

    ref_masked = reference_forward(params, h, x, mask)
    ref_unmasked = reference_forward(params, h, x, jnp.ones((B, S), jnp.int32))

    pp = prepare_params(params, h)          # one-time weight prep (fused / transposed)

    # f32 self-attention with mask — tight check against the reference.
    out = jax.block_until_ready(multi_head_attention(pp, h, x, mask=mask))
    assert out.shape == (B, S, d_model)
    assert jnp.allclose(out, ref_masked, rtol=1e-5, atol=1e-5), "f32 masked mismatch"

    # f32 self-attention without mask — exercises the no-bias kernel specialization.
    out_nm = jax.block_until_ready(multi_head_attention(pp, h, x))
    assert jnp.allclose(out_nm, ref_unmasked, rtol=1e-5, atol=1e-5), "f32 no-mask mismatch"

    # f32 cross-attention path (separate projections; key=value=x so same reference).
    out_x = jax.block_until_ready(multi_head_attention(pp, h, x, key=x, value=x, mask=mask))
    assert jnp.allclose(out_x, ref_masked, rtol=1e-5, atol=1e-5), "cross-attn mismatch"

    # bf16 path — bf16 MXU operands with f32 accumulation.
    params_bf16 = jax.tree_util.tree_map(lambda p: p.astype(jnp.bfloat16), params)
    pp_bf16 = prepare_params(params_bf16, h)
    out_bf16 = jax.block_until_ready(
        multi_head_attention(pp_bf16, h, x.astype(jnp.bfloat16), mask=mask))
    assert jnp.allclose(out_bf16.astype(jnp.float32), ref_masked,
                        rtol=5e-2, atol=5e-2), "bf16 mismatch vs reference"

    print("KERNEL_OK")
</pallas_src>

<mosaic_0001>
module attributes {stable_mosaic.version = 11 : i64} {
  func.func @_matmul_bias_kernel(%arg0: i32, %arg1: i32, %arg2: i32, %arg3: i32, %arg4: memref<16x32xf32, #tpu.memory_space<vmem>>, %arg5: memref<1x32x32xf32, #tpu.memory_space<vmem>>, %arg6: memref<1x1x32xf32, #tpu.memory_space<vmem>>, %arg7: memref<1x16x32xf32, #tpu.memory_space<vmem>>, %arg8: memref<16x32xf32, #tpu.memory_space<vmem>>) attributes {dimension_semantics = [#tpu.dimension_semantics<parallel>, #tpu.dimension_semantics<parallel>, #tpu.dimension_semantics<parallel>, #tpu.dimension_semantics<arbitrary>], iteration_bounds = array<i64: 3, 1, 1, 1>, scalar_prefetch = 0 : i64, scratch_operands = 1 : i64, tpu.core_type = #tpu.core_type<tc>, window_params = [{transform_indices = @transform_0, window_bounds = array<i64: 16, 32>}, {transform_indices = @transform_1, window_bounds = array<i64: 1, 32, 32>}, {transform_indices = @transform_2, window_bounds = array<i64: 1, 1, 32>}, {transform_indices = @transform_3, window_bounds = array<i64: 1, 16, 32>}]} {
    %c0_i32 = arith.constant 0 : i32
    %0 = arith.cmpi eq, %arg3, %c0_i32 : i32
    %1 = arith.extui %0 : i1 to i32
    %c0_i32_0 = arith.constant 0 : i32
    %2 = arith.cmpi ne, %1, %c0_i32_0 : i32
    scf.if %2 {
      %cst_11 = arith.constant 0.000000e+00 : f32
      %13 = vector.broadcast %cst_11 : f32 to vector<16x32xf32>
      %c0_12 = arith.constant 0 : index
      %c0_13 = arith.constant 0 : index
      %14 = vector.load %arg8[%c0_12, %c0_13] : memref<16x32xf32, #tpu.memory_space<vmem>>, vector<16x32xf32>
      tpu.vector_store %arg8[%c0_12, %c0_13], %13 {strides = array<i32>} : memref<16x32xf32, #tpu.memory_space<vmem>>, vector<16x32xf32>,
    } else {
    }
    %c0 = arith.constant 0 : index
    %c0_1 = arith.constant 0 : index
    %3 = vector.load %arg8[%c0, %c0_1] : memref<16x32xf32, #tpu.memory_space<vmem>>, vector<16x32xf32>
    %c0_2 = arith.constant 0 : index
    %c0_3 = arith.constant 0 : index
    %4 = vector.load %arg4[%c0_2, %c0_3] : memref<16x32xf32, #tpu.memory_space<vmem>>, vector<16x32xf32>
    %c0_4 = arith.constant 0 : index
    %c0_5 = arith.constant 0 : index
    %c0_6 = arith.constant 0 : index
    %5 = vector.load %arg5[%c0_4, %c0_5, %c0_6] : memref<1x32x32xf32, #tpu.memory_space<vmem>>, vector<1x32x32xf32>
    %6 = vector.shape_cast %5 : vector<1x32x32xf32> to vector<32x32xf32>
    %cst = arith.constant dense<0.000000e+00> : vector<16x32xf32>
    %7 = tpu.matmul %4, %6, %cst {dimension_numbers = #tpu.dot_dimension_numbers<[1], [0], [0], [1], [0, 0, 1, 1], [], []>} : vector<16x32xf32>, vector<32x32xf32>, vector<16x32xf32> -> vector<16x32xf32>
    %8 = arith.addf %3, %7 : vector<16x32xf32>
    %c0_7 = arith.constant 0 : index
    %c0_8 = arith.constant 0 : index
    %9 = vector.load %arg8[%c0_7, %c0_8] : memref<16x32xf32, #tpu.memory_space<vmem>>, vector<16x32xf32>
    tpu.vector_store %arg8[%c0_7, %c0_8], %8 {strides = array<i32>} : memref<16x32xf32, #tpu.memory_space<vmem>>, vector<16x32xf32>,
    %c0_i32_9 = arith.constant 0 : i32
    %10 = arith.cmpi eq, %arg3, %c0_i32_9 : i32
    %11 = arith.extui %10 : i1 to i32
    %c0_i32_10 = arith.constant 0 : i32
    %12 = arith.cmpi ne, %11, %c0_i32_10 : i32
    scf.if %12 {
      %c0_11 = arith.constant 0 : index
      %c0_12 = arith.constant 0 : index
      %13 = vector.load %arg8[%c0_11, %c0_12] : memref<16x32xf32, #tpu.memory_space<vmem>>, vector<16x32xf32>
      %c0_13 = arith.constant 0 : index
      %c0_14 = arith.constant 0 : index
      %c0_15 = arith.constant 0 : index
      %14 = vector.load %arg6[%c0_13, %c0_14, %c0_15] : memref<1x1x32xf32, #tpu.memory_space<vmem>>, vector<1x1x32xf32>
      %15 = vector.shape_cast %14 : vector<1x1x32xf32> to vector<1x32xf32>
      %16 = vector.broadcast %15 : vector<1x32xf32> to vector<16x32xf32>
      %17 = arith.addf %13, %16 : vector<16x32xf32>
      %c0_16 = arith.constant 0 : index
      %c0_17 = arith.constant 0 : index
      %c0_18 = arith.constant 0 : index
      %18 = vector.load %arg7[%c0_16, %c0_17, %c0_18] : memref<1x16x32xf32, #tpu.memory_space<vmem>>, vector<1x16x32xf32>
      %19 = vector.shape_cast %18 : vector<1x16x32xf32> to vector<16x32xf32>
      %20 = vector.shape_cast %17 : vector<16x32xf32> to vector<1x16x32xf32>
      tpu.vector_store %arg7[%c0_16, %c0_17, %c0_18], %20 {strides = array<i32>} : memref<1x16x32xf32, #tpu.memory_space<vmem>>, vector<1x16x32xf32>,
    } else {
    }
    return
  }
  func.func @transform_0(%arg0: i32, %arg1: i32, %arg2: i32, %arg3: i32) -> (i32, i32) {
    %c0_i32 = arith.constant 0 : i32
    return %arg1, %arg3 : i32, i32
  }
  func.func @transform_1(%arg0: i32, %arg1: i32, %arg2: i32, %arg3: i32) -> (i32, i32, i32) {
    %c0_i32 = arith.constant 0 : i32
    return %arg0, %arg3, %arg2 : i32, i32, i32
  }
  func.func @transform_2(%arg0: i32, %arg1: i32, %arg2: i32, %arg3: i32) -> (i32, i32, i32) {
    %c0_i32 = arith.constant 0 : i32
    %c0_i32_0 = arith.constant 0 : i32
    return %arg0, %c0_i32, %arg2 : i32, i32, i32
  }
  func.func @transform_3(%arg0: i32, %arg1: i32, %arg2: i32, %arg3: i32) -> (i32, i32, i32) {
    %c0_i32 = arith.constant 0 : i32
    return %arg0, %arg1, %arg2 : i32, i32, i32
  }
}

</mosaic_0001>

<bundles_post_ra>
// kernel: tpu_custom_call.1
= control target key start
LH: loop header
LB: loop body
LE: loop exit
PB: predicated region body
PF: predicated region fallthrough
CT: control target
= control target key end

     0   :  { %8 = vsyncpa [#allocation4], 0  ;;  %s1073_s0 = inlined_call_operand.hbm [shape: f32[16,32], index: 0, kind: input, shape index: {}]   ;;  %s1074_s1 = inlined_call_operand.hbm [shape: f32[3,32,32], index: 1, kind: input, shape index: {}]   ;;  %s1075_s2 = inlined_call_operand.vmem [shape: f32[3,1,32], index: 2, kind: input, shape index: {}]   ;;  %s1076_s3 = inlined_call_operand.hbm [shape: f32[3,16,32], index: 3, kind: output, shape index: {}]  }
   0x1   :  { %9 = vsyncpa [#allocation7], 0 }
   0x2   :  { %11 = vsyncpa [#allocation7 + $0x1], 0 }
   0x3   :  { %12 = vsyncpa [#allocation5], 0 }
   0x4   :  { %14 = vsyncpa [#allocation5 + $0x1], 0  ;;  %s836_s12 = smov 0   ;;  %s838_s13 = smov 0  }
   0x5   :  { %s840_s14 = smov 0   ;;  %s842_s15 = smov 0  }
   0x6   :  { %s844_s16 = smov 0   ;;  %s846_s17 = smov 0  }
   0x7 LB: > { %s537_s18 = sadd.s32 4294967295, %s806_s17   ;;  %s538_s19 = sadd.s32 4294967294, %s806_s17   ;;  %s806_s17 = sphi %s846_s17, %s20_s17   ;;  %s802_s16 = sphi %s844_s16, %s1099_s16   ;;  %s798_s15 = sphi %s842_s15, %s1098_s15   ;;  %s794_s14 = sphi %s840_s14, %s1097_s14   ;;  %s790_s13 = sphi %s838_s13, %s1096_s13   ;;  %s786_s12 = sphi %s836_s12, %s1095_s12  }
   0x8   : > { %p98_p0 = scmp.ne.s32.totalorder %s790_s13, %s786_s12  ;;  %p870_p1 = scmp.eq.s32.totalorder %s537_s18, 0 }
   0x9   : > { %p874_p2 = scmp.eq.s32.totalorder %s537_s18, 2  ;;  %p160_p3 = scmp.eq.s32.totalorder %s538_s19, 2 }
   0xa   : > { %s1081_s20 = scalar_select %p870_p1, 1, 0 }
   0xb   : > { %s1082_s21 = scalar_select %p874_p2, 1, 0 }
   0xc   : > { %p880_p4 = por %p870_p1, %p98_p0  ;;  %p539_p5 = scmp.ge.s32.totalorder %s806_s17, 1 }
   0xd   : > { %p885_p6 = por %p160_p3, %p98_p0  ;;  %p167_p7 = scmp.lt.s32.totalorder %s806_s17, 4 }
   0xe   : > { %s1083_s22 = scalar_select %p880_p4, 1, 0 }
   0xf   : > { %s1084_s23 = scalar_select %p885_p6, 1, 0 }
  0x10   : > { %p890_p8 = pnand %p539_p5, %p167_p7  ;;  %s808_s25 = smov [#allocation3]  }
  0x11   : > { %s183_s26 = sshll.u32 %s808_s25, 4  ;;  %s46_s28 = sadd.s32 1, %s802_s16  ;;  %s184_s26 = int_to_ptr.vmem [resolvable:$true] %s183_s26 }
  0x12   : > { %s1085_s24 = scalar_select %p890_p8, 1, 0 }
  0x13   : > { %p592_p9 = pneg %p890_p8  ;;  %s662_s4 = scalar_lea.hbm %s1073_s0, 256 }
  0x14   : > { %p663_p11 = scmp.ne.s32.totalorder %s1073_s0, %s662_s4  ;;  %p669_p3 = scmp.lt.u32.totalorder %s662_s4, %s1073_s0 }
  0x15   : > { %p898_p10 = pnand %p592_p9, %p870_p1 }
  0x17   : > { %p664_p12 = pneg %p898_p10 }
  0x19   : > { %p665_p13 = pnand %p664_p12, %p663_p11 }
  0x1b   : > { %p666_p0 = pneg %p665_p13 }
  0x1d   : > { %p671_p5 = pnand %p669_p3, %p666_p0 }
  0x1f   : > { %674 = shalt.err (!%p671_p5)
}
  0x20   : > { %s675_s9 = scalar_lea.vmem %s184_s26, 256  ;;  %p683_p4 = scmp.lt.s32.totalorder %s184_s26, %s184_s26 }
  0x21   : > { %p676_p7 = scmp.ne.s32.totalorder %s184_s26, %s675_s9  ;;  %p684_p1 = scmp.lt.s32.totalorder %s675_s9, %s675_s9 }
  0x23   : > { %p678_p9 = pnand %p676_p7, %p664_p12  ;;  %p685_p8 = por %p684_p1, %p683_p4 }
  0x25   : > { %p679_p6 = pneg %p678_p9 }
  0x27   : > { %p686_p2 = pnand %p685_p8, %p679_p6 }
  0x29   : > { %689 = shalt.err (!%p686_p2)
}
  0x2a   : > { %s809_s10 = smov 128   ;;  %s810_s11 = smov 8  }
  0x2b   : > { %595 = dma.hbm_to_vmem [thread:$0]  (!%p898_p10), %s1073_s0, 256, %s184_s26, [#allocation4], %s809_s10, %s809_s10, %s810_s11  }
  0x2c   : > { %p48_p1 = scmp.ge.s32.totalorder %s46_s28, 3  ;;  %s85_s25 = sadd.s32 1, %s794_s14 }
  0x2d   : > { %p92_p2 = scmp.ne.s32.totalorder %s794_s14, %s790_s13  ;;  %p93_p4 = scmp.eq.s32.totalorder %s806_s17, 0 }
  0x2e   : > { %s1101_s28 = smov (%p48_p1, %s46_s28), 0  ;;  %p1088_p8 = scmp.ne.s32.totalorder %s1082_s21, 0 }
  0x2f   : > { %p928_p6 = por %p93_p4, %p92_p2  ;;  %s78_s30 = ssub.s32 %s802_s16, %s1101_s28 }
  0x30   : > { %p934_p11 = por %p1088_p8, %p92_p2  ;;  %p605_p12 = scmp.lt.s32.totalorder %s806_s17, 3 }
  0x31   : > { %p83_p10 = scmp.eq.s32.totalorder %s78_s30, 0  ;;  %s197_s26 = sand.u32 1, %s794_s14  }
  0x32   : > { %s542_s4 = sshll.u32 %s197_s26, 5  ;;  %s557_s6 = sshll.u32 %s802_s16, 9 }
  0x33   : > { %s943_s5 = scalar_select %p83_p10, %s794_s14, %s85_s25  }
  0x34   : > { %s949_s9 = scalar_lea.hbm %s1074_s1, %s557_s6  ;;  %s201_s21 = scalar_lea.vmem [#allocation6], %s542_s4 }
  0x35   : > { %s211_s18 = sshll.u32 %s201_s21, 4  ;;  %p955_p13 = pnand %p605_p12, %p928_p6  ;;  %s951_s18 = int_to_ptr.vmem [resolvable:$true] %s211_s18 }
  0x36   : > { %s959_s25 = scalar_lea.sflag [#allocation7], %s197_s26  ;;  %s690_s30 = scalar_lea.hbm %s949_s9, 512 }
  0x37   : > { %p691_p0 = scmp.ne.s32.totalorder %s949_s9, %s690_s30  ;;  %p692_p3 = pneg %p955_p13 }
  0x38   : > { %s695_s29 = scalar_lea.hbm %s1074_s1, 1536  ;;  %p696_p9 = scmp.lt.u32.totalorder %s949_s9, %s1074_s1 }
  0x39   : > { %p693_p5 = pnand %p692_p3, %p691_p0  ;;  %p697_p1 = scmp.lt.u32.totalorder %s695_s29, %s690_s30 }
  0x3a   : > { %p699_p4 = scmp.lt.u32.totalorder %s690_s30, %s949_s9 }
  0x3b   : > { %p694_p7 = pneg %p693_p5  ;;  %p698_p2 = por %p697_p1, %p696_p9 }
  0x3d   : > { %p700_p6 = por %p699_p4, %p698_p2 }
  0x3f   : > { %p701_p8 = pnand %p700_p6, %p694_p7 }
  0x41   : > { %704 = shalt.err (!%p701_p8)
}
  0x42   : > { %s705_s26 = scalar_lea.vmem %s951_s18, 512  ;;  %s811_s21 = smov [#allocation6]  }
  0x43   : > { %p706_p12 = scmp.ne.s32.totalorder %s951_s18, %s705_s26  ;;  %s710_s4 = sshll.u32 %s811_s21, 4  ;;  %s711_s4 = int_to_ptr.vmem [resolvable:$false] %s710_s4 }
  0x44   : > { %s712_s6 = scalar_lea.vmem %s711_s4, 1024  ;;  %p713_p5 = scmp.lt.s32.totalorder %s951_s18, %s711_s4 }
  0x45   : > { %p708_p10 = pnand %p706_p12, %p692_p3  ;;  %p714_p9 = scmp.lt.s32.totalorder %s712_s6, %s705_s26 }
  0x47   : > { %p709_p0 = pneg %p708_p10  ;;  %p715_p1 = por %p714_p9, %p713_p5 }
  0x49   : > { %p716_p2 = pnand %p715_p1, %p709_p0 }
  0x4b   : > { %719 = shalt.err (!%p716_p2)
}
  0x4c   : > { %599 = dma.hbm_to_vmem [thread:$0]  (!%p955_p13), %s949_s9, 512, %s951_s18, %s959_s25, %s809_s10, %s809_s10, %s810_s11  }
  0x4d   : > { %p1091_p3 = scmp.ne.s32.totalorder %s1085_s24, 0 }
  0x4e   : > { %p1092_p7 = scmp.ne.s32.totalorder (!%p1091_p3), %s1081_s20, 0 }
  0x4f   : > { %232 = sbr.rel (%p1091_p3) target bundleno = 342 (0x156), region = 32 }
  0x56   : > { %773 = dma.done.wait (%p1092_p7), [#allocation4], 256  }
  0x57   : > { %775 = vsyncadd (%p1092_p7), [#allocation4], 4294967040  ;;  %s997_s30 = sand.u32 1, %s790_s13   ;;  %p1093_p4 = scmp.ne.s32.totalorder %s1083_s22, 0 }
  0x58   : > { %s547_s19 = sshll.u32 %s997_s30, 5  ;;  %s239_s29 = scalar_lea.sflag [#allocation7], %s997_s30 }
  0x59   : > { %s242_s7 = scalar_lea.vmem [#allocation6], %s547_s19 }
  0x5a   : > { %777 = dma.done.wait (%p1093_p4), %s239_s29, 512  }
  0x5b   : > { %779 = vsyncadd (%p1093_p4), %s239_s29, 4294966784  ;;  %vm284_vm0 = vcmask 261120   ;;  %v812_v0 = vmov 0.0   ;;  %v291_v1 = vld [vmem:[%s242_s7] sm:$0xff]  ;;  %v292_v2 = vld [vmem:[%s242_s7 + $0x8] sm:$0xff]  ;;  %p273_p13 = scmp.lt.s32.totalorder %s798_s15, 2 }
  0x5c   : > { %286 = vst.msk [vmem:[#allocation2 + $0x8] sm:$0xff] %vm284_vm0, %v812_v0  ;;  %285 = vst.msk [vmem:[#allocation2] sm:$0xff] %vm284_vm0, %v812_v0  ;;  %v293_v3 = vld [vmem:[%s242_s7 + $0x10] sm:$0xff]  ;;  %v576_v4 = vpack.c.bf16 %v292_v2, %v291_v1  ;;  %v294_v5 = vld [vmem:[%s242_s7 + $0x18] sm:$0xff]  ;;  %s548_s22 = sshll.u32 %s997_s30, 4  ;;  %s558_s9 = sshll.u32 %s798_s15, 8 }
  0x5d   : > { %v289_v6 = vld [vmem:[#allocation3] sm:$0xff]  ;;  %v580_v7 = vpack.c.bf16 %v294_v5, %v293_v3  ;;  %v290_v8 = vld [vmem:[#allocation3 + $0x8] sm:$0xff]  ;;  %s274_s20 = scalar_select %p273_p13, %s798_s15, 2 }
  0x5e   : > { %573 = vmatprep.mubr.msk.f32.mxu0 %vm284_vm0, %v289_v6  ;;  %577 = vmatprep.subr.bf16.mxu0 %v576_v4  ;;  %s270_s18 = scalar_lea.vmem [#allocation8], %s548_s22  ;;  %s1021_s21 = scalar_lea.hbm %s1076_s3, %s558_s9 }
  0x5f   : > { %579 = vmatpush3.bf16.msra.mxu0 %v576_v4  ;;  %s278_s11 = scalar_lea.vmem %s1075_s2, %s274_s20  ;;  %s414_s25 = sshll.u32 %s270_s18, 4  ;;  %s1023_s25 = int_to_ptr.vmem [resolvable:$true] %s414_s25 }
  0x60   : > { %581 = vmatprep.subr.bf16.mxu0 %v580_v7  ;;  %v551_v15 = vld [vmem:[%s278_s11] ss:$0 sm:$0xff]  ;;  %s398_s15 = scalar_lea.sflag [#allocation5], %s997_s30  ;;  %s720_s4 = scalar_lea.vmem %s1023_s25, 256 }
  0x61   : > { %p721_p6 = scmp.ne.s32.totalorder %s1023_s25, %s720_s4  ;;  %s813_s6 = smov [#allocation8]  }
  0x62   : > { %s724_s19 = sshll.u32 %s813_s6, 4  ;;  %s725_s19 = int_to_ptr.vmem [resolvable:$false] %s724_s19 }
  0x63   : > { %583 = vmatpush3.bf16.msra.mxu0 %v580_v7  ;;  %v288_v9 = vld [vmem:[#allocation2 + $0x8] sm:$0xff]  ;;  %v287_v10 = vld [vmem:[#allocation2] sm:$0xff]  ;;  %p722_p8 = pnand %p721_p6, %p934_p11  ;;  %s726_s29 = scalar_lea.vmem %s725_s19, 512 }
  0x64   : > { %p727_p10 = scmp.lt.s32.totalorder %s1023_s25, %s725_s19  ;;  %p728_p0 = scmp.lt.s32.totalorder %s726_s29, %s720_s4 }
  0x65   : > { %p723_p12 = pneg %p722_p8 }
  0x66   : > { %574 = vmatmul.mubr.msk.f32.vlgmr.msra.gmra.mrb[0].mxu0 %vm284_vm0, %v290_v8  ;;  %p729_p5 = por %p728_p0, %p727_p10 }
  0x68   : > { %p730_p9 = pnand %p729_p5, %p723_p12 }
 0x139   : > { %v575_v11 = vpop.f32.mrb[0].mxu0 }
 0x13a   : > { %v378_v12 = vadd.f32 %v575_v11, %v288_v9  ;;  %v368_v13 = vpop.f32.mrb[1].mxu0 }
 0x13b   : > { %v377_v14 = vadd.f32 %v368_v13, %v287_v10 }
 0x13c   : > { %380 = vst.msk [vmem:[#allocation2 + $0x8] sm:$0xff] %vm284_vm0, %v378_v12 }
 0x13d   : > { %379 = vst.msk [vmem:[#allocation2] sm:$0xff] %vm284_vm0, %v377_v14 }
 0x143   : > { %v385_v16 = vld [vmem:[#allocation2 + $0x8] sm:$0xff] }
 0x144   : > { %v384_v17 = vld [vmem:[#allocation2] sm:$0xff]  ;;  %v394_v18 = vadd.f32 %v551_v15, %v385_v16 }
 0x145   : > { %v393_v19 = vadd.f32 %v551_v15, %v384_v17 }
 0x146   : > { %396 = vst.msk [vmem:[%s270_s18 + $0x8] sm:$0xff] %vm284_vm0, %v394_v18 }
 0x147   : > { %395 = vst.msk [vmem:[%s270_s18] sm:$0xff] %vm284_vm0, %v393_v19 }
 0x148   : > { %733 = shalt.err (!%p730_p9)
}
 0x149   : > { %s734_s7 = scalar_lea.hbm %s1021_s21, 256  ;;  %s738_s24 = scalar_lea.hbm %s1076_s3, 768 }
 0x14a   : > { %p735_p1 = scmp.ne.s32.totalorder %s1021_s21, %s734_s7  ;;  %p739_p7 = scmp.lt.u32.totalorder %s1021_s21, %s1076_s3 }
 0x14b   : > { %p740_p4 = scmp.lt.u32.totalorder %s738_s24, %s734_s7  ;;  %p742_p6 = scmp.lt.u32.totalorder %s734_s7, %s1021_s21 }
 0x14c   : > { %p736_p2 = pnand %p735_p1, %p934_p11 }
 0x14d   : > { %p741_p13 = por %p740_p4, %p739_p7 }
 0x14e   : > { %p737_p3 = pneg %p736_p2 }
 0x14f   : > { %p743_p8 = por %p742_p6, %p741_p13 }
 0x151   : > { %p744_p12 = pnand %p743_p8, %p737_p3 }
 0x153   : > { %747 = shalt.err (!%p744_p12)
}
 0x154   : > { %s814_s9 = smov 128   ;;  %s815_s18 = smov 8  }
 0x155   : > { %590 = dma.vmem_to_hbm [thread:$0]  (%p934_p11), %s1023_s25, 256, %s1021_s21, %s398_s15, %s814_s9, %s814_s9, %s815_s18  }
 0x156 PF: > { %p607_p10 = scmp.ge.s32.totalorder %s806_s17, 2  ;;  %s429_s8 = sand.u32 1, %s786_s12  }
 0x157   : > { %p1094_p0 = scmp.ne.s32.totalorder %s1084_s23, 0  ;;  %s430_s26 = scalar_lea.sflag [#allocation5], %s429_s8 }
 0x159   : > { %p601_p5 = pnand %p607_p10, %p1094_p0 }
 0x15b   : > { %781 = dma.done.wait (!%p601_p5), %s430_s26, 256  }
 0x15c   : > { %783 = vsyncadd (!%p601_p5), %s430_s26, 4294967040  ;;  %s20_s17 = sadd.s32 1, %s806_s17   ;;  %s1095_s12 = smov %s790_s13 }
 0x15d   : > { %p17_p9 = scmp.ge.s32.totalorder %s20_s17, 5   ;;  %s1096_s13 = smov %s794_s14 }
 0x15e   : > { %s1097_s14 = smov %s943_s5  ;;  %s1098_s15 = smov %s802_s16 }
 0x15f   : > { %s1099_s16 = smov %s1101_s28  ;;  %19 = sbr.rel (!%p17_p9) target bundleno = 7 (0x7), region = 94 }
 0x166   :  { %435 = vsyncpa [#allocation4], 1 }
 0x167   :  { %437 = vsyncpa [#allocation4 + $0x1], 1 }
 0x168   :  { %438 = vsyncpa [#allocation7], 1 }
 0x169   :  { %440 = vsyncpa [#allocation7 + $0x1], 1 }
 0x16a   :  { %441 = vsyncpa [#allocation5], 1 }
 0x16b   :  { %443 = vsyncpa [#allocation5 + $0x1], 1 }

</bundles_post_ra>
